<compile_context>
chip_gen: v7x
topology: tpu7x:2x2x1
jax: 0.10.0
libtpu: 0.0.40
codegen_flags: <defaults>
</compile_context>

<pallas_src>
import functools

import numpy as np
import jax
import jax.numpy as jnp
from jax.experimental import pallas as pl
from jax.experimental.pallas import tpu as pltpu


def _banded_conv_kernel(x_ref, w_ref, scale_ref, shift_ref, o_ref, *, act):
    """One grid step: (TM, KF) @ (KF, TQ) -> (TM, TQ) with f32 accumulation.

    x_ref:     (TM, KF)  bf16  depth-im2col rows (KF = K*H*W*Cin)
    w_ref:     (KF, TQ)  bf16  banded conv weights (TQ = lane-dense Q tile)
    scale_ref: (1, TQ)   f32   per-channel BN scale, tiled over (H_out, W_out)
    shift_ref: (1, TQ)   f32   per-channel shift (BN shift and/or conv bias)
    o_ref:     (TM, TQ)  bf16  output block (lane-dense)
    """
    acc = jnp.dot(x_ref[...], w_ref[...], preferred_element_type=jnp.float32)
    acc = acc * scale_ref[...] + shift_ref[...]
    if act:
        acc = jnp.maximum(acc, 0.0)
    o_ref[...] = acc.astype(o_ref.dtype)


def _round_up(x, m):
    return ((x + m - 1) // m) * m


def _choose_tq(q, kf, budget_bytes=8 << 20):
    """Largest lane-dense (multiple-of-128) divisor of q whose bf16 weight
    block (kf, tq) fits the per-operand VMEM budget.  If q is not a multiple
    of 128, the full-dim block is used (always legal)."""
    if q % 128 != 0 or kf * q * 2 <= budget_bytes:
        return q
    cands = [t for t in range(128, q + 1, 128) if q % t == 0]
    fitting = [t for t in cands if kf * t * 2 <= budget_bytes]
    return max(fitting) if fitting else min(cands)


def make_basic_conv3d_params(weight, bias=None, *, kernel_size, H, W,
                             bn_params=None):
    """Precompute the banded weight matrix and the f32 epilogue scale/shift.

    weight: (K, K, K, Cin, Cout) f32 (DHWIO).  Returns
      B:       (K*H*W*Cin, H_out*W_out*Cout)  bf16
      scale_q: (1, H_out*W_out*Cout)          f32
      shift_q: (1, H_out*W_out*Cout)          f32
    Called once per weight set (hoisted out of the per-forward path).
    """
    K = kernel_size
    Cout = weight.shape[-1]
    pad = K // 2 if K >= 2 else 0
    H_out = H + 2 * pad - K + 1
    W_out = W + 2 * pad - K + 1
    Cin = weight.shape[-2]
    F = H * W * Cin
    Q = H_out * W_out * Cout

    # Eval-mode BatchNorm3d / conv bias -> f32 epilogue scale & shift.
    # TODO(synk): training-mode BatchNorm (batch statistics) not implemented.
    if bn_params is not None:
        gamma, beta, mean, var, eps = bn_params
        scale = (gamma / jnp.sqrt(var + eps)).astype(jnp.float32)
        shift = (beta - mean * scale).astype(jnp.float32)
        if bias is not None:
            shift = shift + bias.astype(jnp.float32) * scale
    else:
        scale = jnp.ones((Cout,), jnp.float32)
        shift = (bias.astype(jnp.float32) if bias is not None
                 else jnp.zeros((Cout,), jnp.float32))

    # Banded weights:
    #   B[(kd, h_in, w_in, c), (h, w, o)] = weight[kd, h_in-h+pad, w_in-w+pad, c, o]
    # when the tap is in range, else 0 -> the ConstantPad3d zero padding in
    # H and W is folded into the weights for free.
    SH = (jnp.arange(H)[:, None, None] ==
          (jnp.arange(K)[None, :, None] +
           jnp.arange(H_out)[None, None, :] - pad)).astype(jnp.float32)
    SW = (jnp.arange(W)[:, None, None] ==
          (jnp.arange(K)[None, :, None] +
           jnp.arange(W_out)[None, None, :] - pad)).astype(jnp.float32)
    B = jnp.einsum('aih,bjw,dijco->dabchwo', SH, SW, weight.astype(jnp.float32))
    B = B.reshape(K * F, Q).astype(jnp.bfloat16)

    scale_q = jnp.tile(scale, H_out * W_out).reshape(1, Q)
    shift_q = jnp.tile(shift, H_out * W_out).reshape(1, Q)
    return B, scale_q, shift_q


def basic_conv3d_apply(x, B, scale_q, shift_q, *, kernel_size, act=False,
                       out_dtype=jnp.bfloat16):
    """x: (N, D, H, W, Cin); B/scale_q/shift_q from make_basic_conv3d_params."""
    N, D, H, W, Cin = x.shape
    K = kernel_size
    pad = K // 2 if K >= 2 else 0
    D_out = D + 2 * pad - K + 1
    H_out = H + 2 * pad - K + 1
    W_out = W + 2 * pad - K + 1
    F = H * W * Cin
    KF = K * F
    Q = B.shape[1]
    Cout = Q // (H_out * W_out)
    assert B.shape[0] == KF

    # Depth im2col: only the depth axis needs explicit zero padding (H/W
    # padding lives in the banded weights).  All kernel loads become full
    # aligned blocks (no runtime-unaligned pl.ds slices).
    x2 = x.reshape(N, D, F).astype(jnp.bfloat16)
    xp = jnp.pad(x2, ((0, 0), (pad, pad), (0, 0)))              # (N, D+2p, F)
    cols = jnp.stack([xp[:, dd:dd + D_out, :] for dd in range(K)], axis=2)
    xim = cols.reshape(N * D_out, KF)                           # (M, K*F)

    # M tile: batch and output depth folded into the MXU M dimension.
    M_total = N * D_out
    TM = min(256, _round_up(M_total, 16))
    M_pad = _round_up(M_total, TM)
    # Q tile: lane-dense, sized so the weight block fits a per-operand VMEM
    # budget (v7x: 64 MiB/TC, duplicated per core under megacore sharding).
    TQ = _choose_tq(Q, KF)
    n_m, n_q = M_pad // TM, Q // TQ
    if n_m * n_q == 1 and M_pad % 32 == 0:
        # Keep >= 2 balanced parallel steps so both v7x TensorCores get work.
        TM = M_pad // 2
        n_m = 2
    if M_pad != M_total:
        xim = jnp.pad(xim, ((0, M_pad - M_total), (0, 0)))      # zero rows,
        # their outputs are discarded below.

    out_itemsize = np.dtype(out_dtype).itemsize
    vmem_est = (2 * TM * KF * 2            # x blocks (double-buffered bf16)
                + 2 * KF * TQ * 2          # weight blocks
                + 2 * TM * TQ * out_itemsize
                + 4 * TQ * 4 * 2)          # scale/shift blocks (f32)
    vmem_limit = (int(min(1.5 * vmem_est + (4 << 20), 112 << 20))
                  if vmem_est > (24 << 20) else None)

    kernel = functools.partial(_banded_conv_kernel, act=act)
    out = pl.pallas_call(
        kernel,
        out_shape=jax.ShapeDtypeStruct((M_pad, Q), out_dtype),
        grid_spec=pltpu.PrefetchScalarGridSpec(
            num_scalar_prefetch=0,
            grid=(n_m, n_q),
            in_specs=[
                pl.BlockSpec((TM, KF), lambda m, q: (m, 0)),
                pl.BlockSpec((KF, TQ), lambda m, q: (0, q)),
                pl.BlockSpec((1, TQ), lambda m, q: (0, q)),
                pl.BlockSpec((1, TQ), lambda m, q: (0, q)),
            ],
            out_specs=pl.BlockSpec((TM, TQ), lambda m, q: (m, q)),
        ),
        compiler_params=pltpu.CompilerParams(
            dimension_semantics=("parallel", "parallel"),
            vmem_limit_bytes=vmem_limit),
    )(xim, B, scale_q, shift_q)

    return out[:M_total].reshape(N, D_out, H_out, W_out, Cout)


if __name__ == "__main__":
    # BasicConv3D(in_ch=4, out_ch=8, kernel_size=3): pad=1; bias='auto'
    # -> Conv3d bias=True when bn=False, bias=False when bn=True.
    N, Cin, D, H, W = 2, 4, 8, 8, 8
    Cout, KS = 8, 3

    key = jax.random.PRNGKey(0)
    kx, kw, kb, kg, kbt, km, kv = jax.random.split(key, 7)
    x = jax.random.normal(kx, (N, D, H, W, Cin), jnp.float32)
    weight = jax.random.normal(kw, (KS, KS, KS, Cin, Cout), jnp.float32) * 0.1
    bias = jax.random.normal(kb, (Cout,), jnp.float32) * 0.1

    # Reference on bf16-rounded operands (kernel computes bf16*bf16 with f32
    # accumulation and a bf16 output cast).
    x_r = x.astype(jnp.bfloat16).astype(jnp.float32)
    w_r = weight.astype(jnp.bfloat16).astype(jnp.float32)
    conv_ref = jax.lax.conv_general_dilated(
        x_r, w_r, window_strides=(1, 1, 1),
        padding=[(KS // 2, KS // 2)] * 3,
        dimension_numbers=("NDHWC", "DHWIO", "NDHWC"),
        precision=jax.lax.Precision.HIGHEST)

    # ---- Config 1: bn=False, act=False (Conv3d with bias). ----
    B1, sc1, sh1 = make_basic_conv3d_params(weight, bias, kernel_size=KS, H=H, W=W)
    conv1 = jax.jit(functools.partial(basic_conv3d_apply, kernel_size=KS, act=False))
    out1 = jax.block_until_ready(conv1(x, B1, sc1, sh1))
    assert out1.shape == (N, D, H, W, Cout), out1.shape

    ref1 = conv_ref + bias
    err1 = float(jnp.max(jnp.abs(out1.astype(jnp.float32) - ref1)))
    assert err1 < 5e-2, err1            # bf16 output rounding dominates

    # ---- Config 2: bn=True (eval mode), act=True, conv bias disabled. ----
    gamma = 1.0 + 0.1 * jax.random.normal(kg, (Cout,), jnp.float32)
    beta = 0.1 * jax.random.normal(kbt, (Cout,), jnp.float32)
    mean = 0.1 * jax.random.normal(km, (Cout,), jnp.float32)
    var = jax.random.uniform(kv, (Cout,), jnp.float32, 0.5, 1.5)
    eps = 1e-5
    B2, sc2, sh2 = make_basic_conv3d_params(
        weight, None, kernel_size=KS, H=H, W=W,
        bn_params=(gamma, beta, mean, var, eps))
    conv2 = jax.jit(functools.partial(basic_conv3d_apply, kernel_size=KS, act=True))
    out2 = jax.block_until_ready(conv2(x, B2, sc2, sh2))

    s = gamma / jnp.sqrt(var + eps)
    ref2 = jnp.maximum(conv_ref * s + (beta - mean * s), 0.0)
    err2 = float(jnp.max(jnp.abs(out2.astype(jnp.float32) - ref2)))
    assert err2 < 7e-2, err2            # scaled |y|~8 -> bf16 ulp/2 ~ 0.03

    print("KERNEL_OK")
</pallas_src>

<mosaic_0001>
module attributes {stable_mosaic.version = 11 : i64} {
  func.func @_banded_conv_kernel(%arg0: i32, %arg1: i32, %arg2: memref<16x768xbf16, #tpu.memory_space<vmem>>, %arg3: memref<768x512xbf16, #tpu.memory_space<vmem>>, %arg4: memref<1x512xf32, #tpu.memory_space<vmem>>, %arg5: memref<1x512xf32, #tpu.memory_space<vmem>>, %arg6: memref<16x512xbf16, #tpu.memory_space<vmem>>) attributes {dimension_semantics = [#tpu.dimension_semantics<parallel>, #tpu.dimension_semantics<parallel>], iteration_bounds = array<i64: 1, 1>, scalar_prefetch = 0 : i64, scratch_operands = 0 : i64, tpu.core_type = #tpu.core_type<tc>, window_params = [{transform_indices = @transform_0, window_bounds = array<i64: 16, 768>}, {transform_indices = @transform_1, window_bounds = array<i64: 768, 512>}, {transform_indices = @transform_2, window_bounds = array<i64: 1, 512>}, {transform_indices = @transform_3, window_bounds = array<i64: 1, 512>}, {transform_indices = @transform_4, window_bounds = array<i64: 16, 512>}]} {
    %c0 = arith.constant 0 : index
    %c0_0 = arith.constant 0 : index
    %0 = vector.load %arg2[%c0, %c0_0] : memref<16x768xbf16, #tpu.memory_space<vmem>>, vector<16x768xbf16>
    %c0_1 = arith.constant 0 : index
    %c0_2 = arith.constant 0 : index
    %1 = vector.load %arg3[%c0_1, %c0_2] : memref<768x512xbf16, #tpu.memory_space<vmem>>, vector<768x512xbf16>
    %cst = arith.constant dense<0.000000e+00> : vector<16x512xf32>
    %2 = tpu.matmul %0, %1, %cst {dimension_numbers = #tpu.dot_dimension_numbers<[1], [0], [0], [1], [0, 0, 1, 1], [], []>} : vector<16x768xbf16>, vector<768x512xbf16>, vector<16x512xf32> -> vector<16x512xf32>
    %c0_3 = arith.constant 0 : index
    %c0_4 = arith.constant 0 : index
    %3 = vector.load %arg4[%c0_3, %c0_4] : memref<1x512xf32, #tpu.memory_space<vmem>>, vector<1x512xf32>
    %4 = vector.broadcast %3 : vector<1x512xf32> to vector<16x512xf32>
    %5 = arith.mulf %2, %4 : vector<16x512xf32>
    %c0_5 = arith.constant 0 : index
    %c0_6 = arith.constant 0 : index
    %6 = vector.load %arg5[%c0_5, %c0_6] : memref<1x512xf32, #tpu.memory_space<vmem>>, vector<1x512xf32>
    %7 = vector.broadcast %6 : vector<1x512xf32> to vector<16x512xf32>
    %8 = arith.addf %5, %7 : vector<16x512xf32>
    %9 = arith.truncf %8 : vector<16x512xf32> to vector<16x512xbf16>
    %c0_7 = arith.constant 0 : index
    %c0_8 = arith.constant 0 : index
    %10 = vector.load %arg6[%c0_7, %c0_8] : memref<16x512xbf16, #tpu.memory_space<vmem>>, vector<16x512xbf16>
    tpu.vector_store %arg6[%c0_7, %c0_8], %9 {strides = array<i32>} : memref<16x512xbf16, #tpu.memory_space<vmem>>, vector<16x512xbf16>,
    return
  }
  func.func @transform_0(%arg0: i32, %arg1: i32) -> (i32, i32) {
    %c0_i32 = arith.constant 0 : i32
    %c0_i32_0 = arith.constant 0 : i32
    return %arg0, %c0_i32 : i32, i32
  }
  func.func @transform_1(%arg0: i32, %arg1: i32) -> (i32, i32) {
    %c0_i32 = arith.constant 0 : i32
    %c0_i32_0 = arith.constant 0 : i32
    return %c0_i32, %arg1 : i32, i32
  }
  func.func @transform_2(%arg0: i32, %arg1: i32) -> (i32, i32) {
    %c0_i32 = arith.constant 0 : i32
    %c0_i32_0 = arith.constant 0 : i32
    return %c0_i32, %arg1 : i32, i32
  }
  func.func @transform_3(%arg0: i32, %arg1: i32) -> (i32, i32) {
    %c0_i32 = arith.constant 0 : i32
    %c0_i32_0 = arith.constant 0 : i32
    return %c0_i32, %arg1 : i32, i32
  }
  func.func @transform_4(%arg0: i32, %arg1: i32) -> (i32, i32) {
    %c0_i32 = arith.constant 0 : i32
    return %arg0, %arg1 : i32, i32
  }
}

</mosaic_0001>

<bundles_post_ra>
// kernel: basic_conv3d_apply.1
= control target key start
LH: loop header
LB: loop body
LE: loop exit
PB: predicated region body
PF: predicated region fallthrough
CT: control target
= control target key end

     0   :  { %s2711_s1 = inlined_call_operand.vmem [shape: bf16[768,512], index: 1, kind: input, shape index: {}]   ;;  %s2712_s0 = inlined_call_operand.vmem [shape: bf16[16,768], index: 0, kind: input, shape index: {}]   ;;  %s2713_s2 = inlined_call_operand.vmem [shape: f32[1,512], index: 2, kind: input, shape index: {}]   ;;  %s2714_s3 = inlined_call_operand.vmem [shape: f32[1,512], index: 3, kind: input, shape index: {}]   ;;  %s2715_s4 = inlined_call_operand.vmem [shape: bf16[16,512], index: 4, kind: output, shape index: {}]  }
   0x1   :  { %v1777_v0 = vld [vmem:[%s2711_s1 + $0x4] ss:$16 sps:$4 sm:$0xff]   ;;  %v1779_v1 = vld [vmem:[%s2711_s1 + $0xc] ss:$16 sps:$4 sm:$0xff]   ;;  %v1781_v2 = vld [vmem:[%s2711_s1] ss:$16 sps:$4 sm:$0xff]  }
   0x2   :  { %1205 = vmatprep.subr.bf16.mxu0 %v1777_v0  ;;  %v1782_v3 = vld [vmem:[%s2711_s1 + $0x8] ss:$16 sps:$4 sm:$0xff]   ;;  %1334 = vmatprep.subr.bf16.mxu1 %v1779_v1  ;;  %v1783_v4 = vld [vmem:[%s2711_s1 + $0x24] ss:$16 sps:$4 sm:$0xff]   ;;  %v1785_v5 = vld [vmem:[%s2711_s1 + $0x2c] ss:$16 sps:$4 sm:$0xff]  }
   0x3   :  { %1206 = vmatpush1.bf16.msra.mxu0 %v1781_v2  ;;  %1335 = vmatpush1.bf16.msra.mxu1 %v1782_v3  ;;  %v1787_v6 = vld [vmem:[%s2711_s1 + $0x20] ss:$16 sps:$4 sm:$0xff]   ;;  %v1788_v7 = vld [vmem:[%s2711_s1 + $0x28] ss:$16 sps:$4 sm:$0xff]   ;;  %v1789_v8 = vld [vmem:[%s2711_s1 + $0x44] ss:$16 sps:$4 sm:$0xff]  }
   0x4   :  { %1207 = vmatprep.subr.bf16.mxu0 %v1783_v4  ;;  %1336 = vmatprep.subr.bf16.mxu1 %v1785_v5  ;;  %v1791_v9 = vld [vmem:[%s2711_s1 + $0x4c] ss:$16 sps:$4 sm:$0xff]   ;;  %v1793_v10 = vld [vmem:[%s2711_s1 + $0x40] ss:$16 sps:$4 sm:$0xff]   ;;  %v1794_v11 = vld [vmem:[%s2711_s1 + $0x48] ss:$16 sps:$4 sm:$0xff]  }
   0x5   :  { %v1795_v12 = vld [vmem:[%s2711_s1 + $0x64] ss:$16 sps:$4 sm:$0xff]   ;;  %v1797_v13 = vld [vmem:[%s2711_s1 + $0x6c] ss:$16 sps:$4 sm:$0xff]   ;;  %v1799_v14 = vld [vmem:[%s2711_s1 + $0x60] ss:$16 sps:$4 sm:$0xff]  }
   0x6   :  { %v1800_v15 = vld [vmem:[%s2711_s1 + $0x68] ss:$16 sps:$4 sm:$0xff]   ;;  %v1801_v16 = vld [vmem:[%s2711_s1 + $0x84] ss:$16 sps:$4 sm:$0xff]   ;;  %v1803_v17 = vld [vmem:[%s2711_s1 + $0x8c] ss:$16 sps:$4 sm:$0xff]  }
   0x7   :  { %1208 = vmatpush1.bf16.msra.mxu0 %v1787_v6  ;;  %1337 = vmatpush1.bf16.msra.mxu1 %v1788_v7  ;;  %v1805_v18 = vld [vmem:[%s2711_s1 + $0x80] ss:$16 sps:$4 sm:$0xff]   ;;  %v1806_v19 = vld [vmem:[%s2711_s1 + $0x88] ss:$16 sps:$4 sm:$0xff]   ;;  %v1807_v20 = vld [vmem:[%s2711_s1 + $0xa4] ss:$16 sps:$4 sm:$0xff]  }
   0x8   :  { %1209 = vmatprep.subr.bf16.mxu0 %v1789_v8  ;;  %1338 = vmatprep.subr.bf16.mxu1 %v1791_v9  ;;  %v1809_v21 = vld [vmem:[%s2711_s1 + $0xac] ss:$16 sps:$4 sm:$0xff]   ;;  %v1811_v22 = vld [vmem:[%s2711_s1 + $0xa0] ss:$16 sps:$4 sm:$0xff]   ;;  %v1812_v23 = vld [vmem:[%s2711_s1 + $0xa8] ss:$16 sps:$4 sm:$0xff]  }
   0x9   :  { %v1813_v24 = vld [vmem:[%s2711_s1 + $0xc4] ss:$16 sps:$4 sm:$0xff]   ;;  %v1815_v25 = vld [vmem:[%s2711_s1 + $0xcc] ss:$16 sps:$4 sm:$0xff]   ;;  %v1817_v26 = vld [vmem:[%s2711_s1 + $0xc0] ss:$16 sps:$4 sm:$0xff]  }
   0xa   :  { %v1818_v27 = vld [vmem:[%s2711_s1 + $0xc8] ss:$16 sps:$4 sm:$0xff]   ;;  %v1819_v28 = vld [vmem:[%s2711_s1 + $0xe4] ss:$16 sps:$4 sm:$0xff]   ;;  %v1821_v29 = vld [vmem:[%s2711_s1 + $0xec] ss:$16 sps:$4 sm:$0xff]  }
   0xb   :  { %1210 = vmatpush1.bf16.msra.mxu0 %v1793_v10  ;;  %1339 = vmatpush1.bf16.msra.mxu1 %v1794_v11  ;;  %v1823_v30 = vld [vmem:[%s2711_s1 + $0xe0] ss:$16 sps:$4 sm:$0xff]   ;;  %v1824_v31 = vld [vmem:[%s2711_s1 + $0xe8] ss:$16 sps:$4 sm:$0xff]   ;;  %v1825_v32 = vld [vmem:[%s2711_s1 + $0x104] ss:$16 sps:$4 sm:$0xff]  }
   0xc   :  { %1211 = vmatprep.subr.bf16.mxu0 %v1795_v12  ;;  %1340 = vmatprep.subr.bf16.mxu1 %v1797_v13  ;;  %v1827_v33 = vld [vmem:[%s2711_s1 + $0x10c] ss:$16 sps:$4 sm:$0xff]   ;;  %v1829_v34 = vld [vmem:[%s2711_s1 + $0x100] ss:$16 sps:$4 sm:$0xff]   ;;  %v1830_v35 = vld [vmem:[%s2711_s1 + $0x108] ss:$16 sps:$4 sm:$0xff]  }
   0xd   :  { %v1831_v36 = vld [vmem:[%s2711_s1 + $0x124] ss:$16 sps:$4 sm:$0xff]   ;;  %v1833_v37 = vld [vmem:[%s2711_s1 + $0x12c] ss:$16 sps:$4 sm:$0xff]   ;;  %v1835_v38 = vld [vmem:[%s2711_s1 + $0x120] ss:$16 sps:$4 sm:$0xff]  }
   0xe   :  { %v1836_v39 = vld [vmem:[%s2711_s1 + $0x128] ss:$16 sps:$4 sm:$0xff]   ;;  %v1837_v40 = vld [vmem:[%s2711_s1 + $0x144] ss:$16 sps:$4 sm:$0xff]   ;;  %v1839_v41 = vld [vmem:[%s2711_s1 + $0x14c] ss:$16 sps:$4 sm:$0xff]  }
   0xf   :  { %1212 = vmatpush1.bf16.msra.mxu0 %v1799_v14  ;;  %1341 = vmatpush1.bf16.msra.mxu1 %v1800_v15  ;;  %v1841_v42 = vld [vmem:[%s2711_s1 + $0x140] ss:$16 sps:$4 sm:$0xff]   ;;  %v1842_v43 = vld [vmem:[%s2711_s1 + $0x148] ss:$16 sps:$4 sm:$0xff]   ;;  %v1843_v44 = vld [vmem:[%s2711_s1 + $0x164] ss:$16 sps:$4 sm:$0xff]  }
  0x10   :  { %1213 = vmatprep.subr.bf16.mxu0 %v1801_v16  ;;  %1342 = vmatprep.subr.bf16.mxu1 %v1803_v17  ;;  %v1845_v45 = vld [vmem:[%s2711_s1 + $0x16c] ss:$16 sps:$4 sm:$0xff]   ;;  %v1847_v46 = vld [vmem:[%s2711_s1 + $0x160] ss:$16 sps:$4 sm:$0xff]   ;;  %v1848_v47 = vld [vmem:[%s2711_s1 + $0x168] ss:$16 sps:$4 sm:$0xff]  }
  0x11   :  { %v1875_v48 = vld [vmem:[%s2712_s0 + $0x4] ss:$24 sps:$4 sm:$0xff]   ;;  %v1853_v51 = vld [vmem:[%s2711_s1 + $0x180] ss:$16 sps:$4 sm:$0xff]   ;;  %v1854_v52 = vld [vmem:[%s2711_s1 + $0x188] ss:$16 sps:$4 sm:$0xff]  }
  0x12   :  { %v1849_v49 = vld [vmem:[%s2711_s1 + $0x184] ss:$16 sps:$4 sm:$0xff]   ;;  %v1851_v50 = vld [vmem:[%s2711_s1 + $0x18c] ss:$16 sps:$4 sm:$0xff]   ;;  %1237 = vmatprep.mubr.bf16.mxu0 %v1875_v48  ;;  %1366 = vmatprep.mubr.bf16.mxu1 %v1875_v48  ;;  %v1859_v55 = vld [vmem:[%s2711_s1 + $0x1a0] ss:$16 sps:$4 sm:$0xff]  }
  0x13   :  { %1214 = vmatpush1.bf16.msra.mxu0 %v1805_v18  ;;  %1343 = vmatpush1.bf16.msra.mxu1 %v1806_v19  ;;  %v1855_v53 = vld [vmem:[%s2711_s1 + $0x1a4] ss:$16 sps:$4 sm:$0xff]   ;;  %v1857_v54 = vld [vmem:[%s2711_s1 + $0x1ac] ss:$16 sps:$4 sm:$0xff]   ;;  %v1860_v56 = vld [vmem:[%s2711_s1 + $0x1a8] ss:$16 sps:$4 sm:$0xff]  }
  0x14   :  { %1215 = vmatprep.subr.bf16.mxu0 %v1807_v20  ;;  %1344 = vmatprep.subr.bf16.mxu1 %v1809_v21  ;;  %v1861_v57 = vld [vmem:[%s2711_s1 + $0x1c4] ss:$16 sps:$4 sm:$0xff]   ;;  %v1863_v58 = vld [vmem:[%s2711_s1 + $0x1cc] ss:$16 sps:$4 sm:$0xff]   ;;  %v1865_v59 = vld [vmem:[%s2711_s1 + $0x1c0] ss:$16 sps:$4 sm:$0xff]  }
  0x15   :  { %v1866_v60 = vld [vmem:[%s2711_s1 + $0x1c8] ss:$16 sps:$4 sm:$0xff]   ;;  %v1867_v61 = vld [vmem:[%s2711_s1 + $0x1e4] ss:$16 sps:$4 sm:$0xff]   ;;  %v1869_v62 = vld [vmem:[%s2711_s1 + $0x1ec] ss:$16 sps:$4 sm:$0xff]  }
  0x16   :  { %v1871_v63 = vld [vmem:[%s2711_s1 + $0x1e0] ss:$16 sps:$4 sm:$0xff]   ;;  %v1872_v0 = vld [vmem:[%s2711_s1 + $0x1e8] ss:$16 sps:$4 sm:$0xff]   ;;  %v1878_v1 = vld [vmem:[%s2711_s1 + $0x204] ss:$16 sps:$4 sm:$0xff]  }
  0x17   :  { %1216 = vmatpush1.bf16.msra.mxu0 %v1811_v22  ;;  %1345 = vmatpush1.bf16.msra.mxu1 %v1812_v23  ;;  %v1881_v2 = vld [vmem:[%s2711_s1 + $0x20c] ss:$16 sps:$4 sm:$0xff]   ;;  %v1873_v3 = vld [vmem:[%s2712_s0] ss:$24 sps:$4 sm:$0xff]   ;;  %v1884_v6 = vld [vmem:[%s2711_s1 + $0x224] ss:$16 sps:$4 sm:$0xff]  }
  0x18   :  { %1217 = vmatprep.subr.bf16.mxu0 %v1813_v24  ;;  %1346 = vmatprep.subr.bf16.mxu1 %v1815_v25  ;;  %v1876_v4 = vld [vmem:[%s2711_s1 + $0x200] ss:$16 sps:$4 sm:$0xff]   ;;  %v1879_v5 = vld [vmem:[%s2711_s1 + $0x208] ss:$16 sps:$4 sm:$0xff]   ;;  %v1887_v7 = vld [vmem:[%s2711_s1 + $0x22c] ss:$16 sps:$4 sm:$0xff]  }
  0x19   :  { %v1882_v8 = vld [vmem:[%s2711_s1 + $0x220] ss:$16 sps:$4 sm:$0xff]   ;;  %v1885_v9 = vld [vmem:[%s2711_s1 + $0x228] ss:$16 sps:$4 sm:$0xff]   ;;  %v1890_v10 = vld [vmem:[%s2711_s1 + $0x244] ss:$16 sps:$4 sm:$0xff]  }
  0x1a   :  { %v1893_v11 = vld [vmem:[%s2711_s1 + $0x24c] ss:$16 sps:$4 sm:$0xff]   ;;  %v1888_v12 = vld [vmem:[%s2711_s1 + $0x240] ss:$16 sps:$4 sm:$0xff]   ;;  %v1891_v13 = vld [vmem:[%s2711_s1 + $0x248] ss:$16 sps:$4 sm:$0xff]  }
  0x1b   :  { %1218 = vmatpush1.bf16.msra.mxu0 %v1817_v26  ;;  %1347 = vmatpush1.bf16.msra.mxu1 %v1818_v27  ;;  %v1896_v14 = vld [vmem:[%s2711_s1 + $0x264] ss:$16 sps:$4 sm:$0xff]   ;;  %v1899_v15 = vld [vmem:[%s2711_s1 + $0x26c] ss:$16 sps:$4 sm:$0xff]   ;;  %v1894_v16 = vld [vmem:[%s2711_s1 + $0x260] ss:$16 sps:$4 sm:$0xff]  }
  0x1c   :  { %1219 = vmatprep.subr.bf16.mxu0 %v1819_v28  ;;  %1348 = vmatprep.subr.bf16.mxu1 %v1821_v29  ;;  %v1897_v17 = vld [vmem:[%s2711_s1 + $0x268] ss:$16 sps:$4 sm:$0xff]   ;;  %v1902_v18 = vld [vmem:[%s2711_s1 + $0x284] ss:$16 sps:$4 sm:$0xff]   ;;  %v1905_v19 = vld [vmem:[%s2711_s1 + $0x28c] ss:$16 sps:$4 sm:$0xff]  }
  0x1d   :  { %v1900_v20 = vld [vmem:[%s2711_s1 + $0x280] ss:$16 sps:$4 sm:$0xff]   ;;  %v1903_v21 = vld [vmem:[%s2711_s1 + $0x288] ss:$16 sps:$4 sm:$0xff]   ;;  %v1908_v22 = vld [vmem:[%s2711_s1 + $0x2a4] ss:$16 sps:$4 sm:$0xff]  }
  0x1e   :  { %v1911_v23 = vld [vmem:[%s2711_s1 + $0x2ac] ss:$16 sps:$4 sm:$0xff]   ;;  %v1906_v24 = vld [vmem:[%s2711_s1 + $0x2a0] ss:$16 sps:$4 sm:$0xff]   ;;  %v1909_v25 = vld [vmem:[%s2711_s1 + $0x2a8] ss:$16 sps:$4 sm:$0xff]  }
  0x1f   :  { %1220 = vmatpush1.bf16.msra.mxu0 %v1823_v30  ;;  %1349 = vmatpush1.bf16.msra.mxu1 %v1824_v31  ;;  %v1914_v26 = vld [vmem:[%s2711_s1 + $0x2c4] ss:$16 sps:$4 sm:$0xff]   ;;  %v1917_v27 = vld [vmem:[%s2711_s1 + $0x2cc] ss:$16 sps:$4 sm:$0xff]   ;;  %v1912_v28 = vld [vmem:[%s2711_s1 + $0x2c0] ss:$16 sps:$4 sm:$0xff]  }
  0x20   :  { %1221 = vmatprep.subr.bf16.mxu0 %v1825_v32  ;;  %1350 = vmatprep.subr.bf16.mxu1 %v1827_v33  ;;  %v1915_v29 = vld [vmem:[%s2711_s1 + $0x2c8] ss:$16 sps:$4 sm:$0xff]   ;;  %v1974_v30 = vld [vmem:[%s2712_s0 + $0xc] ss:$24 sps:$4 sm:$0xff]   ;;  %v1918_v33 = vld [vmem:[%s2711_s1 + $0x2e0] ss:$16 sps:$4 sm:$0xff]  }
  0x21   :  { %v1920_v31 = vld [vmem:[%s2711_s1 + $0x2e4] ss:$16 sps:$4 sm:$0xff]   ;;  %v1923_v32 = vld [vmem:[%s2711_s1 + $0x2ec] ss:$16 sps:$4 sm:$0xff]  }
  0x22   :  { %v1947_v48 = vld [vmem:[%s2711_s1 + $0x36c] ss:$16 sps:$4 sm:$0xff]  }
  0x23   :  { %1222 = vmatpush1.bf16.msra.mxu0 %v1829_v34  ;;  %1351 = vmatpush1.bf16.msra.mxu1 %v1830_v35  ;;  %v1921_v34 = vld [vmem:[%s2711_s1 + $0x2e8] ss:$16 sps:$4 sm:$0xff]   ;;  %v1926_v35 = vld [vmem:[%s2711_s1 + $0x304] ss:$16 sps:$4 sm:$0xff]  }
  0x24   :  { %1223 = vmatprep.subr.bf16.mxu0 %v1831_v36  ;;  %1352 = vmatprep.subr.bf16.mxu1 %v1833_v37  ;;  %v1929_v36 = vld [vmem:[%s2711_s1 + $0x30c] ss:$16 sps:$4 sm:$0xff]   ;;  %v1924_v37 = vld [vmem:[%s2711_s1 + $0x300] ss:$16 sps:$4 sm:$0xff]  }
  0x27   :  { %1224 = vmatpush1.bf16.msra.mxu0 %v1835_v38  ;;  %1353 = vmatpush1.bf16.msra.mxu1 %v1836_v39  ;;  %v1927_v38 = vld [vmem:[%s2711_s1 + $0x308] ss:$16 sps:$4 sm:$0xff]   ;;  %v1932_v39 = vld [vmem:[%s2711_s1 + $0x324] ss:$16 sps:$4 sm:$0xff]  }
  0x28   :  { %1225 = vmatprep.subr.bf16.mxu0 %v1837_v40  ;;  %1354 = vmatprep.subr.bf16.mxu1 %v1839_v41  ;;  %v1935_v40 = vld [vmem:[%s2711_s1 + $0x32c] ss:$16 sps:$4 sm:$0xff]   ;;  %v1930_v41 = vld [vmem:[%s2711_s1 + $0x320] ss:$16 sps:$4 sm:$0xff]  }
  0x2b   :  { %1226 = vmatpush1.bf16.msra.mxu0 %v1841_v42  ;;  %1355 = vmatpush1.bf16.msra.mxu1 %v1842_v43  ;;  %v1933_v42 = vld [vmem:[%s2711_s1 + $0x328] ss:$16 sps:$4 sm:$0xff]   ;;  %v1938_v43 = vld [vmem:[%s2711_s1 + $0x344] ss:$16 sps:$4 sm:$0xff]  }
  0x2c   :  { %1227 = vmatprep.subr.bf16.mxu0 %v1843_v44  ;;  %1356 = vmatprep.subr.bf16.mxu1 %v1845_v45  ;;  %v1941_v44 = vld [vmem:[%s2711_s1 + $0x34c] ss:$16 sps:$4 sm:$0xff]   ;;  %v1936_v45 = vld [vmem:[%s2711_s1 + $0x340] ss:$16 sps:$4 sm:$0xff]  }
  0x2f   :  { %1228 = vmatpush1.bf16.msra.mxu0 %v1847_v46  ;;  %1357 = vmatpush1.bf16.msra.mxu1 %v1848_v47  ;;  %v1939_v46 = vld [vmem:[%s2711_s1 + $0x348] ss:$16 sps:$4 sm:$0xff]   ;;  %v1944_v47 = vld [vmem:[%s2711_s1 + $0x364] ss:$16 sps:$4 sm:$0xff]  }
  0x30   :  { %1229 = vmatprep.subr.bf16.mxu0 %v1849_v49  ;;  %1358 = vmatprep.subr.bf16.mxu1 %v1851_v50  ;;  %v1942_v49 = vld [vmem:[%s2711_s1 + $0x360] ss:$16 sps:$4 sm:$0xff]   ;;  %v1945_v50 = vld [vmem:[%s2711_s1 + $0x368] ss:$16 sps:$4 sm:$0xff]  }
  0x33   :  { %1230 = vmatpush1.bf16.msra.mxu0 %v1853_v51  ;;  %1359 = vmatpush1.bf16.msra.mxu1 %v1854_v52  ;;  %v1950_v51 = vld [vmem:[%s2711_s1 + $0x384] ss:$16 sps:$4 sm:$0xff]   ;;  %v1953_v52 = vld [vmem:[%s2711_s1 + $0x38c] ss:$16 sps:$4 sm:$0xff]  }
  0x34   :  { %1231 = vmatprep.subr.bf16.mxu0 %v1855_v53  ;;  %1360 = vmatprep.subr.bf16.mxu1 %v1857_v54  ;;  %v1948_v53 = vld [vmem:[%s2711_s1 + $0x380] ss:$16 sps:$4 sm:$0xff]   ;;  %v1951_v54 = vld [vmem:[%s2711_s1 + $0x388] ss:$16 sps:$4 sm:$0xff]  }
  0x37   :  { %1232 = vmatpush1.bf16.msra.mxu0 %v1859_v55  ;;  %1361 = vmatpush1.bf16.msra.mxu1 %v1860_v56  ;;  %v1956_v55 = vld [vmem:[%s2711_s1 + $0x3a4] ss:$16 sps:$4 sm:$0xff]   ;;  %v1959_v56 = vld [vmem:[%s2711_s1 + $0x3ac] ss:$16 sps:$4 sm:$0xff]  }
  0x38   :  { %1233 = vmatprep.subr.bf16.mxu0 %v1861_v57  ;;  %1362 = vmatprep.subr.bf16.mxu1 %v1863_v58  ;;  %v1954_v57 = vld [vmem:[%s2711_s1 + $0x3a0] ss:$16 sps:$4 sm:$0xff]   ;;  %v1957_v58 = vld [vmem:[%s2711_s1 + $0x3a8] ss:$16 sps:$4 sm:$0xff]  }
  0x3b   :  { %1234 = vmatpush1.bf16.msra.mxu0 %v1865_v59  ;;  %1363 = vmatpush1.bf16.msra.mxu1 %v1866_v60  ;;  %v1962_v59 = vld [vmem:[%s2711_s1 + $0x3c4] ss:$16 sps:$4 sm:$0xff]   ;;  %v1965_v60 = vld [vmem:[%s2711_s1 + $0x3cc] ss:$16 sps:$4 sm:$0xff]  }
  0x3c   :  { %1235 = vmatprep.subr.bf16.mxu0 %v1867_v61  ;;  %1364 = vmatprep.subr.bf16.mxu1 %v1869_v62  ;;  %v1960_v61 = vld [vmem:[%s2711_s1 + $0x3c0] ss:$16 sps:$4 sm:$0xff]   ;;  %v1963_v62 = vld [vmem:[%s2711_s1 + $0x3c8] ss:$16 sps:$4 sm:$0xff]  }
  0x3f   :  { %1236 = vmatpush1.bf16.msra.mxu0 %v1871_v63  ;;  %1365 = vmatpush1.bf16.msra.mxu1 %v1872_v0  ;;  %v1968_v63 = vld [vmem:[%s2711_s1 + $0x3e4] ss:$16 sps:$4 sm:$0xff]   ;;  %v1971_v0 = vld [vmem:[%s2711_s1 + $0x3ec] ss:$16 sps:$4 sm:$0xff]  }
  0x40   :  { %1248 = vmatprep.subr.bf16.mxu0 %v1878_v1  ;;  %1377 = vmatprep.subr.bf16.mxu1 %v1881_v2  ;;  %v1966_v1 = vld [vmem:[%s2711_s1 + $0x3e0] ss:$16 sps:$4 sm:$0xff]   ;;  %v1969_v2 = vld [vmem:[%s2711_s1 + $0x3e8] ss:$16 sps:$4 sm:$0xff]  }
  0x42   :  { %1238 = vmatmul.mubr.bf16.vlgmr.msra.gmra.mrb[0].mxu0 %v1873_v3  ;;  %1367 = vmatmul.mubr.bf16.vlgmr.msra.gmra.mrb[0].mxu1 %v1873_v3  ;;  %v1977_v3 = vld [vmem:[%s2711_s1 + $0x404] ss:$16 sps:$4 sm:$0xff]  }
  0x43   :  { %1249 = vmatpush1.bf16.msra.mxu0 %v1876_v4  ;;  %1378 = vmatpush1.bf16.msra.mxu1 %v1879_v5  ;;  %v1980_v4 = vld [vmem:[%s2711_s1 + $0x40c] ss:$16 sps:$4 sm:$0xff]   ;;  %v1972_v5 = vld [vmem:[%s2712_s0 + $0x8] ss:$24 sps:$4 sm:$0xff]  }
  0x44   :  { %1250 = vmatprep.subr.bf16.mxu0 %v1884_v6  ;;  %1379 = vmatprep.subr.bf16.mxu1 %v1887_v7  ;;  %v1975_v6 = vld [vmem:[%s2711_s1 + $0x400] ss:$16 sps:$4 sm:$0xff]   ;;  %v1978_v7 = vld [vmem:[%s2711_s1 + $0x408] ss:$16 sps:$4 sm:$0xff]  }
  0x45   :  { %1280 = vmatprep.mubr.bf16.mxu0 %v1974_v30  ;;  %1409 = vmatprep.mubr.bf16.mxu1 %v1974_v30  ;;  %v2016_v30 = vld [vmem:[%s2711_s1 + $0x4cc] ss:$16 sps:$4 sm:$0xff]  }
  0x47   :  { %1251 = vmatpush1.bf16.msra.mxu0 %v1882_v8  ;;  %1380 = vmatpush1.bf16.msra.mxu1 %v1885_v9  ;;  %v1983_v8 = vld [vmem:[%s2711_s1 + $0x424] ss:$16 sps:$4 sm:$0xff]   ;;  %v1986_v9 = vld [vmem:[%s2711_s1 + $0x42c] ss:$16 sps:$4 sm:$0xff]  }
  0x48   :  { %1252 = vmatprep.subr.bf16.mxu0 %v1890_v10  ;;  %1381 = vmatprep.subr.bf16.mxu1 %v1893_v11  ;;  %v2073_v10 = vld [vmem:[%s2712_s0 + $0x14] ss:$24 sps:$4 sm:$0xff]   ;;  %v1981_v11 = vld [vmem:[%s2711_s1 + $0x420] ss:$16 sps:$4 sm:$0xff]  }
  0x4b   :  { %1253 = vmatpush1.bf16.msra.mxu0 %v1888_v12  ;;  %1382 = vmatpush1.bf16.msra.mxu1 %v1891_v13  ;;  %v1984_v12 = vld [vmem:[%s2711_s1 + $0x428] ss:$16 sps:$4 sm:$0xff]   ;;  %v1989_v13 = vld [vmem:[%s2711_s1 + $0x444] ss:$16 sps:$4 sm:$0xff]  }
  0x4c   :  { %1254 = vmatprep.subr.bf16.mxu0 %v1896_v14  ;;  %1383 = vmatprep.subr.bf16.mxu1 %v1899_v15  ;;  %v1992_v14 = vld [vmem:[%s2711_s1 + $0x44c] ss:$16 sps:$4 sm:$0xff]   ;;  %v1987_v15 = vld [vmem:[%s2711_s1 + $0x440] ss:$16 sps:$4 sm:$0xff]  }
  0x4f   :  { %1255 = vmatpush1.bf16.msra.mxu0 %v1894_v16  ;;  %1384 = vmatpush1.bf16.msra.mxu1 %v1897_v17  ;;  %v1990_v16 = vld [vmem:[%s2711_s1 + $0x448] ss:$16 sps:$4 sm:$0xff]   ;;  %v1995_v17 = vld [vmem:[%s2711_s1 + $0x464] ss:$16 sps:$4 sm:$0xff]  }
  0x50   :  { %1256 = vmatprep.subr.bf16.mxu0 %v1902_v18  ;;  %1385 = vmatprep.subr.bf16.mxu1 %v1905_v19  ;;  %v1998_v18 = vld [vmem:[%s2711_s1 + $0x46c] ss:$16 sps:$4 sm:$0xff]   ;;  %v1993_v19 = vld [vmem:[%s2711_s1 + $0x460] ss:$16 sps:$4 sm:$0xff]  }
  0x53   :  { %1257 = vmatpush1.bf16.msra.mxu0 %v1900_v20  ;;  %1386 = vmatpush1.bf16.msra.mxu1 %v1903_v21  ;;  %v1996_v20 = vld [vmem:[%s2711_s1 + $0x468] ss:$16 sps:$4 sm:$0xff]   ;;  %v2001_v21 = vld [vmem:[%s2711_s1 + $0x484] ss:$16 sps:$4 sm:$0xff]  }
  0x54   :  { %1258 = vmatprep.subr.bf16.mxu0 %v1908_v22  ;;  %1387 = vmatprep.subr.bf16.mxu1 %v1911_v23  ;;  %v2004_v22 = vld [vmem:[%s2711_s1 + $0x48c] ss:$16 sps:$4 sm:$0xff]   ;;  %v1999_v23 = vld [vmem:[%s2711_s1 + $0x480] ss:$16 sps:$4 sm:$0xff]  }
  0x57   :  { %1259 = vmatpush1.bf16.msra.mxu0 %v1906_v24  ;;  %1388 = vmatpush1.bf16.msra.mxu1 %v1909_v25  ;;  %v2002_v24 = vld [vmem:[%s2711_s1 + $0x488] ss:$16 sps:$4 sm:$0xff]   ;;  %v2007_v25 = vld [vmem:[%s2711_s1 + $0x4a4] ss:$16 sps:$4 sm:$0xff]  }
  0x58   :  { %1260 = vmatprep.subr.bf16.mxu0 %v1914_v26  ;;  %1389 = vmatprep.subr.bf16.mxu1 %v1917_v27  ;;  %v2010_v26 = vld [vmem:[%s2711_s1 + $0x4ac] ss:$16 sps:$4 sm:$0xff]   ;;  %v2005_v27 = vld [vmem:[%s2711_s1 + $0x4a0] ss:$16 sps:$4 sm:$0xff]  }
  0x5b   :  { %1261 = vmatpush1.bf16.msra.mxu0 %v1912_v28  ;;  %1390 = vmatpush1.bf16.msra.mxu1 %v1915_v29  ;;  %v2008_v28 = vld [vmem:[%s2711_s1 + $0x4a8] ss:$16 sps:$4 sm:$0xff]   ;;  %v2013_v29 = vld [vmem:[%s2711_s1 + $0x4c4] ss:$16 sps:$4 sm:$0xff]  }
  0x5c   :  { %1262 = vmatprep.subr.bf16.mxu0 %v1920_v31  ;;  %1391 = vmatprep.subr.bf16.mxu1 %v1923_v32  ;;  %v2011_v31 = vld [vmem:[%s2711_s1 + $0x4c0] ss:$16 sps:$4 sm:$0xff]   ;;  %v2014_v32 = vld [vmem:[%s2711_s1 + $0x4c8] ss:$16 sps:$4 sm:$0xff]  }
  0x5f   :  { %1263 = vmatpush1.bf16.msra.mxu0 %v1918_v33  ;;  %1392 = vmatpush1.bf16.msra.mxu1 %v1921_v34  ;;  %v2019_v33 = vld [vmem:[%s2711_s1 + $0x4e4] ss:$16 sps:$4 sm:$0xff]   ;;  %v2022_v34 = vld [vmem:[%s2711_s1 + $0x4ec] ss:$16 sps:$4 sm:$0xff]  }
  0x60   :  { %1264 = vmatprep.subr.bf16.mxu0 %v1926_v35  ;;  %1393 = vmatprep.subr.bf16.mxu1 %v1929_v36  ;;  %v2017_v35 = vld [vmem:[%s2711_s1 + $0x4e0] ss:$16 sps:$4 sm:$0xff]   ;;  %v2020_v36 = vld [vmem:[%s2711_s1 + $0x4e8] ss:$16 sps:$4 sm:$0xff]  }
  0x63   :  { %1265 = vmatpush1.bf16.msra.mxu0 %v1924_v37  ;;  %1394 = vmatpush1.bf16.msra.mxu1 %v1927_v38  ;;  %v2025_v37 = vld [vmem:[%s2711_s1 + $0x504] ss:$16 sps:$4 sm:$0xff]   ;;  %v2028_v38 = vld [vmem:[%s2711_s1 + $0x50c] ss:$16 sps:$4 sm:$0xff]  }
  0x64   :  { %1266 = vmatprep.subr.bf16.mxu0 %v1932_v39  ;;  %1395 = vmatprep.subr.bf16.mxu1 %v1935_v40  ;;  %v2023_v39 = vld [vmem:[%s2711_s1 + $0x500] ss:$16 sps:$4 sm:$0xff]   ;;  %v2026_v40 = vld [vmem:[%s2711_s1 + $0x508] ss:$16 sps:$4 sm:$0xff]  }
  0x67   :  { %1267 = vmatpush1.bf16.msra.mxu0 %v1930_v41  ;;  %1396 = vmatpush1.bf16.msra.mxu1 %v1933_v42  ;;  %v2031_v41 = vld [vmem:[%s2711_s1 + $0x524] ss:$16 sps:$4 sm:$0xff]   ;;  %v2034_v42 = vld [vmem:[%s2711_s1 + $0x52c] ss:$16 sps:$4 sm:$0xff]  }
  0x68   :  { %1268 = vmatprep.subr.bf16.mxu0 %v1938_v43  ;;  %1397 = vmatprep.subr.bf16.mxu1 %v1941_v44  ;;  %v2029_v43 = vld [vmem:[%s2711_s1 + $0x520] ss:$16 sps:$4 sm:$0xff]   ;;  %v2032_v44 = vld [vmem:[%s2711_s1 + $0x528] ss:$16 sps:$4 sm:$0xff]  }
  0x6b   :  { %1269 = vmatpush1.bf16.msra.mxu0 %v1936_v45  ;;  %1398 = vmatpush1.bf16.msra.mxu1 %v1939_v46  ;;  %v2037_v45 = vld [vmem:[%s2711_s1 + $0x544] ss:$16 sps:$4 sm:$0xff]   ;;  %v2040_v46 = vld [vmem:[%s2711_s1 + $0x54c] ss:$16 sps:$4 sm:$0xff]  }
  0x6c   :  { %1270 = vmatprep.subr.bf16.mxu0 %v1944_v47  ;;  %1399 = vmatprep.subr.bf16.mxu1 %v1947_v48  ;;  %v2035_v47 = vld [vmem:[%s2711_s1 + $0x540] ss:$16 sps:$4 sm:$0xff]   ;;  %v2038_v48 = vld [vmem:[%s2711_s1 + $0x548] ss:$16 sps:$4 sm:$0xff]  }
  0x6f   :  { %1271 = vmatpush1.bf16.msra.mxu0 %v1942_v49  ;;  %1400 = vmatpush1.bf16.msra.mxu1 %v1945_v50  ;;  %v2043_v49 = vld [vmem:[%s2711_s1 + $0x564] ss:$16 sps:$4 sm:$0xff]   ;;  %v2046_v50 = vld [vmem:[%s2711_s1 + $0x56c] ss:$16 sps:$4 sm:$0xff]  }
  0x70   :  { %1272 = vmatprep.subr.bf16.mxu0 %v1950_v51  ;;  %1401 = vmatprep.subr.bf16.mxu1 %v1953_v52  ;;  %v2041_v51 = vld [vmem:[%s2711_s1 + $0x560] ss:$16 sps:$4 sm:$0xff]   ;;  %v2044_v52 = vld [vmem:[%s2711_s1 + $0x568] ss:$16 sps:$4 sm:$0xff]  }
  0x73   :  { %1273 = vmatpush1.bf16.msra.mxu0 %v1948_v53  ;;  %1402 = vmatpush1.bf16.msra.mxu1 %v1951_v54  ;;  %v2049_v53 = vld [vmem:[%s2711_s1 + $0x584] ss:$16 sps:$4 sm:$0xff]   ;;  %v2052_v54 = vld [vmem:[%s2711_s1 + $0x58c] ss:$16 sps:$4 sm:$0xff]  }
  0x74   :  { %1274 = vmatprep.subr.bf16.mxu0 %v1956_v55  ;;  %1403 = vmatprep.subr.bf16.mxu1 %v1959_v56  ;;  %v2047_v55 = vld [vmem:[%s2711_s1 + $0x580] ss:$16 sps:$4 sm:$0xff]   ;;  %v2050_v56 = vld [vmem:[%s2711_s1 + $0x588] ss:$16 sps:$4 sm:$0xff]  }
  0x77   :  { %1275 = vmatpush1.bf16.msra.mxu0 %v1954_v57  ;;  %1404 = vmatpush1.bf16.msra.mxu1 %v1957_v58  ;;  %v2055_v57 = vld [vmem:[%s2711_s1 + $0x5a4] ss:$16 sps:$4 sm:$0xff]   ;;  %v2058_v58 = vld [vmem:[%s2711_s1 + $0x5ac] ss:$16 sps:$4 sm:$0xff]  }
  0x78   :  { %1276 = vmatprep.subr.bf16.mxu0 %v1962_v59  ;;  %1405 = vmatprep.subr.bf16.mxu1 %v1965_v60  ;;  %v2053_v59 = vld [vmem:[%s2711_s1 + $0x5a0] ss:$16 sps:$4 sm:$0xff]   ;;  %v2056_v60 = vld [vmem:[%s2711_s1 + $0x5a8] ss:$16 sps:$4 sm:$0xff]  }
  0x7b   :  { %1277 = vmatpush1.bf16.msra.mxu0 %v1960_v61  ;;  %1406 = vmatpush1.bf16.msra.mxu1 %v1963_v62  ;;  %v2061_v61 = vld [vmem:[%s2711_s1 + $0x5c4] ss:$16 sps:$4 sm:$0xff]   ;;  %v2064_v62 = vld [vmem:[%s2711_s1 + $0x5cc] ss:$16 sps:$4 sm:$0xff]  }
  0x7c   :  { %1278 = vmatprep.subr.bf16.mxu0 %v1968_v63  ;;  %1407 = vmatprep.subr.bf16.mxu1 %v1971_v0  ;;  %v2059_v63 = vld [vmem:[%s2711_s1 + $0x5c0] ss:$16 sps:$4 sm:$0xff]   ;;  %v2062_v0 = vld [vmem:[%s2711_s1 + $0x5c8] ss:$16 sps:$4 sm:$0xff]  }
  0x7f   :  { %1279 = vmatpush1.bf16.msra.mxu0 %v1966_v1  ;;  %1408 = vmatpush1.bf16.msra.mxu1 %v1969_v2  ;;  %v2067_v1 = vld [vmem:[%s2711_s1 + $0x5e4] ss:$16 sps:$4 sm:$0xff]   ;;  %v2070_v2 = vld [vmem:[%s2711_s1 + $0x5ec] ss:$16 sps:$4 sm:$0xff]  }
  0x80   :  { %1291 = vmatprep.subr.bf16.mxu0 %v1977_v3  ;;  %1420 = vmatprep.subr.bf16.mxu1 %v1980_v4  ;;  %v2065_v3 = vld [vmem:[%s2711_s1 + $0x5e0] ss:$16 sps:$4 sm:$0xff]   ;;  %v2068_v4 = vld [vmem:[%s2711_s1 + $0x5e8] ss:$16 sps:$4 sm:$0xff]  }
  0x82   :  { %1281 = vmatmul.mubr.bf16.vlgmr.msra.gmra.mrb[0].mxu0 %v1972_v5  ;;  %1410 = vmatmul.mubr.bf16.vlgmr.msra.gmra.mrb[0].mxu1 %v1972_v5  ;;  %v2071_v5 = vld [vmem:[%s2712_s0 + $0x10] ss:$24 sps:$4 sm:$0xff]  }
  0x83   :  { %1292 = vmatpush1.bf16.msra.mxu0 %v1975_v6  ;;  %1421 = vmatpush1.bf16.msra.mxu1 %v1978_v7  ;;  %v1465_v6 = vlaneseq }
  0x84   :  { %1293 = vmatprep.subr.bf16.mxu0 %v1983_v8  ;;  %1422 = vmatprep.subr.bf16.mxu1 %v1986_v9 }
  0x85   :  { %1323 = vmatprep.mubr.bf16.mxu0 %v2073_v10  ;;  %1452 = vmatprep.mubr.bf16.mxu1 %v2073_v10  ;;  %v1466_v7 = vshrl.u32 %v1465_v6, 7  ;;  %v1463_v10 = vld [vmem:[%s2713_s2] sm:$0xf] }
  0x87   :  { %1294 = vmatpush1.bf16.msra.mxu0 %v1981_v11  ;;  %1423 = vmatpush1.bf16.msra.mxu1 %v1984_v12  ;;  %v1467_v8 = vsub.s32 0, %v1466_v7  ;;  %v1475_v9 = vsub.s32 2, %v1466_v7  ;;  %v1471_v11 = vsub.s32 1, %v1466_v7  ;;  %v1479_v12 = vsub.s32 3, %v1466_v7 }
  0x88   :  { %1295 = vmatprep.subr.bf16.mxu0 %v1989_v13  ;;  %1424 = vmatprep.subr.bf16.mxu1 %v1992_v14  ;;  %v1493_v13 = vld [vmem:[%s2714_s3] sm:$0xf] }
  0x89   :  { %v1468_v14 = vrot.slane %v1463_v10, %v1467_v8 }
  0x8b   :  { %1296 = vmatpush1.bf16.msra.mxu0 %v1987_v15  ;;  %1425 = vmatpush1.bf16.msra.mxu1 %v1990_v16  ;;  %v1476_v15 = vrot.slane %v1463_v10, %v1475_v9  ;;  %v1472_v16 = vrot.slane %v1463_v10, %v1471_v11 }
  0x8c   :  { %1297 = vmatprep.subr.bf16.mxu0 %v1995_v17  ;;  %1426 = vmatprep.subr.bf16.mxu1 %v1998_v18  ;;  %v1480_v17 = vrot.slane %v1463_v10, %v1479_v12  ;;  %v1498_v18 = vrot.slane %v1493_v13, %v1467_v8 }
  0x8f   :  { %1298 = vmatpush1.bf16.msra.mxu0 %v1993_v19  ;;  %1427 = vmatpush1.bf16.msra.mxu1 %v1996_v20  ;;  %v1506_v19 = vrot.slane %v1493_v13, %v1475_v9 }
  0x90   :  { %1299 = vmatprep.subr.bf16.mxu0 %v2001_v21  ;;  %1428 = vmatprep.subr.bf16.mxu1 %v2004_v22  ;;  %v1502_v22 = vrot.slane %v1493_v13, %v1471_v11 }
  0x93   :  { %1300 = vmatpush1.bf16.msra.mxu0 %v1999_v23  ;;  %1429 = vmatpush1.bf16.msra.mxu1 %v2002_v24  ;;  %v1510_v23 = vrot.slane %v1493_v13, %v1479_v12 }
  0x94   :  { %1301 = vmatprep.subr.bf16.mxu0 %v2007_v25  ;;  %1430 = vmatprep.subr.bf16.mxu1 %v2010_v26 }
  0x97   :  { %1302 = vmatpush1.bf16.msra.mxu0 %v2005_v27  ;;  %1431 = vmatpush1.bf16.msra.mxu1 %v2008_v28 }
  0x98   :  { %1303 = vmatprep.subr.bf16.mxu0 %v2013_v29  ;;  %1432 = vmatprep.subr.bf16.mxu1 %v2016_v30 }
  0x9b   :  { %1304 = vmatpush1.bf16.msra.mxu0 %v2011_v31  ;;  %1433 = vmatpush1.bf16.msra.mxu1 %v2014_v32 }
  0x9c   :  { %1305 = vmatprep.subr.bf16.mxu0 %v2019_v33  ;;  %1434 = vmatprep.subr.bf16.mxu1 %v2022_v34 }
  0x9f   :  { %1306 = vmatpush1.bf16.msra.mxu0 %v2017_v35  ;;  %1435 = vmatpush1.bf16.msra.mxu1 %v2020_v36 }
  0xa0   :  { %1307 = vmatprep.subr.bf16.mxu0 %v2025_v37  ;;  %1436 = vmatprep.subr.bf16.mxu1 %v2028_v38 }
  0xa3   :  { %1308 = vmatpush1.bf16.msra.mxu0 %v2023_v39  ;;  %1437 = vmatpush1.bf16.msra.mxu1 %v2026_v40 }
  0xa4   :  { %1309 = vmatprep.subr.bf16.mxu0 %v2031_v41  ;;  %1438 = vmatprep.subr.bf16.mxu1 %v2034_v42 }
  0xa7   :  { %1310 = vmatpush1.bf16.msra.mxu0 %v2029_v43  ;;  %1439 = vmatpush1.bf16.msra.mxu1 %v2032_v44 }
  0xa8   :  { %1311 = vmatprep.subr.bf16.mxu0 %v2037_v45  ;;  %1440 = vmatprep.subr.bf16.mxu1 %v2040_v46 }
  0xab   :  { %1312 = vmatpush1.bf16.msra.mxu0 %v2035_v47  ;;  %1441 = vmatpush1.bf16.msra.mxu1 %v2038_v48 }
  0xac   :  { %1313 = vmatprep.subr.bf16.mxu0 %v2043_v49  ;;  %1442 = vmatprep.subr.bf16.mxu1 %v2046_v50 }
  0xaf   :  { %1314 = vmatpush1.bf16.msra.mxu0 %v2041_v51  ;;  %1443 = vmatpush1.bf16.msra.mxu1 %v2044_v52 }
  0xb0   :  { %1315 = vmatprep.subr.bf16.mxu0 %v2049_v53  ;;  %1444 = vmatprep.subr.bf16.mxu1 %v2052_v54 }
  0xb3   :  { %1316 = vmatpush1.bf16.msra.mxu0 %v2047_v55  ;;  %1445 = vmatpush1.bf16.msra.mxu1 %v2050_v56 }
  0xb4   :  { %1317 = vmatprep.subr.bf16.mxu0 %v2055_v57  ;;  %1446 = vmatprep.subr.bf16.mxu1 %v2058_v58 }
  0xb7   :  { %1318 = vmatpush1.bf16.msra.mxu0 %v2053_v59  ;;  %1447 = vmatpush1.bf16.msra.mxu1 %v2056_v60 }
  0xb8   :  { %1319 = vmatprep.subr.bf16.mxu0 %v2061_v61  ;;  %1448 = vmatprep.subr.bf16.mxu1 %v2064_v62 }
  0xbb   :  { %1320 = vmatpush1.bf16.msra.mxu0 %v2059_v63  ;;  %1449 = vmatpush1.bf16.msra.mxu1 %v2062_v0 }
  0xbc   :  { %1321 = vmatprep.subr.bf16.mxu0 %v2067_v1  ;;  %1450 = vmatprep.subr.bf16.mxu1 %v2070_v2 }
  0xbf   :  { %1322 = vmatpush1.bf16.msra.mxu0 %v2065_v3  ;;  %1451 = vmatpush1.bf16.msra.mxu1 %v2068_v4 }
  0xc2   :  { %1324 = vmatmul.mubr.bf16.vlgmr.msra.gmra.mrb[0].mxu0 %v2071_v5  ;;  %1453 = vmatmul.mubr.bf16.vlgmr.msra.gmra.mrb[0].mxu1 %v2071_v5 }
 0x195   :  { %v1325_v20 = vpop.f32.mrb[0].mxu0  ;;  %v1454_v21 = vpop.f32.mrb[0].mxu1 }
 0x196   :  { %v1485_v24 = vmul.f32 %v1468_v14, %v1325_v20  ;;  %v1487_v25 = vmul.f32 %v1476_v15, %v1454_v21  ;;  %v1327_v26 = vpop.f32.mrb[1].mxu0  ;;  %v1456_v27 = vpop.f32.mrb[1].mxu1 }
 0x197   :  { %v1486_v28 = vmul.f32 %v1472_v16, %v1327_v26  ;;  %v1488_v29 = vmul.f32 %v1480_v17, %v1456_v27  ;;  %v1329_v30 = vpop.f32.mrb[2].mxu0  ;;  %v1458_v31 = vpop.f32.mrb[2].mxu1 }
 0x198   :  { %v1515_v32 = vadd.f32 %v1498_v18, %v1485_v24  ;;  %v1517_v33 = vadd.f32 %v1506_v19, %v1487_v25  ;;  %v1489_v34 = vmul.f32 %v1468_v14, %v1329_v30  ;;  %v1491_v35 = vmul.f32 %v1476_v15, %v1458_v31  ;;  %v1331_v36 = vpop.f32.mrb[3].mxu0  ;;  %v1460_v37 = vpop.f32.mrb[3].mxu1 }
 0x199   :  { %v1516_v38 = vadd.f32 %v1502_v22, %v1486_v28  ;;  %v1518_v39 = vadd.f32 %v1510_v23, %v1488_v29  ;;  %v1490_v40 = vmul.f32 %v1472_v16, %v1331_v36  ;;  %v1492_v41 = vmul.f32 %v1480_v17, %v1460_v37 }
 0x19a   :  { %v1519_v42 = vadd.f32 %v1498_v18, %v1489_v34  ;;  %v1521_v43 = vadd.f32 %v1506_v19, %v1491_v35 }
 0x19b   :  { %v1757_v44 = vpack.c.bf16 %v1516_v38, %v1515_v32  ;;  %v1758_v45 = vpack.c.bf16 %v1518_v39, %v1517_v33  ;;  %v1520_v46 = vadd.f32 %v1502_v22, %v1490_v40  ;;  %v1522_v47 = vadd.f32 %v1510_v23, %v1492_v41 }
 0x19d   :  { %1547 = vst [vmem:[%s2715_s4] sm:$0xff] %v1757_v44  ;;  %1548 = vst [vmem:[%s2715_s4 + $0x8] sm:$0xff] %v1758_v45  ;;  %v1759_v48 = vpack.c.bf16 %v1520_v46, %v1519_v42  ;;  %v1760_v49 = vpack.c.bf16 %v1522_v47, %v1521_v43 }
 0x19f   :  { %1549 = vst [vmem:[%s2715_s4 + $0x10] sm:$0xff] %v1759_v48  ;;  %1550 = vst [vmem:[%s2715_s4 + $0x18] sm:$0xff] %v1760_v49 }

</bundles_post_ra>
